<compile_context>
chip_gen: v5e
topology: v5e:2x2
jax: 0.10.0
libtpu: 0.0.40
codegen_flags: <defaults>
</compile_context>

<pallas_src>
import jax
import jax.numpy as jnp
from jax import lax
from jax.experimental import pallas as pl
from jax.experimental.pallas import tpu as pltpu

_LANE = 128
_PACKED_LANES = 512        # packed-output lane width (multiple of 128 -> unmasked stores)
_MAX_ROW_TILE = 1024       # rows per grid step, simple path
_MAX_PACKED_ROW_TILE = 512  # packed rows per grid step, packed path


def _round_up(x: int, m: int) -> int:
    return (x + m - 1) // m * m


# ---------------------------------------------------------------------------
# Kernels
# ---------------------------------------------------------------------------

def _rotary_packed_kernel(pos_ref, w_ref, out_ref):
    # pos_ref: (TSr, k) packed positions (k positions per row)
    # w_ref:   (k, L)   block-diagonal weights, W[j, j*dim + m] = inv_concat[m]
    # out_ref: (TSr, L) lane-dense packed freqs, L = k*dim (multiple of 128)
    out_ref[...] = jnp.dot(
        pos_ref[...], w_ref[...],
        precision=lax.Precision.HIGHEST,
        preferred_element_type=jnp.float32,
    )


def _rotary_simple_kernel(pos_ref, inv_ref, out_ref):
    # pos_ref: (TS, 1), inv_ref: (1, H), out_ref: (TS, 2H)
    h = inv_ref.shape[-1]
    freqs = pos_ref[...] * inv_ref[...]          # outer product -> (TS, H)
    # Write the duplicated halves directly; no concatenate temporary.
    out_ref[:, :h] = freqs
    out_ref[:, h:] = freqs


# ---------------------------------------------------------------------------
# Wrappers
# ---------------------------------------------------------------------------

def _rotary_packed(positions, inv_freq, S, dim):
    k = _PACKED_LANES // dim          # positions packed per output row (>= 8)
    L = k * dim                       # = 512 lanes, unmasked stores
    R = pl.cdiv(S, k)                 # packed rows needed
    TSr = min(_MAX_PACKED_ROW_TILE, _round_up(R, 8))
    R_pad = _round_up(R, TSr)

    # Pad + pack positions: padded entries are zero and sliced off below.
    pos_pad = jnp.zeros((R_pad * k,), jnp.float32).at[:S].set(positions)
    pos_packed = pos_pad.reshape(R_pad, k)

    # Block-diagonal weight so (pos_packed @ W)[r, j*dim + m]
    #   = pos[r*k + j] * inv_concat[m].
    inv_concat = jnp.concatenate([inv_freq, inv_freq])               # (dim,)
    w = (jnp.eye(k, dtype=jnp.float32)[:, :, None]
         * inv_concat[None, None, :]).reshape(k, L)

    out_packed = pl.pallas_call(
        _rotary_packed_kernel,
        out_shape=jax.ShapeDtypeStruct((R_pad, L), jnp.float32),
        grid_spec=pltpu.PrefetchScalarGridSpec(
            num_scalar_prefetch=0,
            grid=(R_pad // TSr,),
            in_specs=[
                pl.BlockSpec((TSr, k), lambda i: (i, 0)),
                pl.BlockSpec((k, L), lambda i: (0, 0)),   # resident weights
            ],
            out_specs=pl.BlockSpec((TSr, L), lambda i: (i, 0)),
        ),
        compiler_params=pltpu.CompilerParams(
            dimension_semantics=("parallel",)),
    )(pos_packed, w)

    # (R_pad, k*dim) is row-major contiguous with (R_pad*k, dim): free view.
    return out_packed.reshape(R_pad * k, dim)[:S]


def _rotary_simple(positions, inv_freq, S, H):
    dim = 2 * H
    TS = min(_MAX_ROW_TILE, _round_up(S, 8))
    S_pad = _round_up(S, TS)

    pos_pad = jnp.zeros((S_pad, 1), jnp.float32).at[:S, 0].set(positions)
    inv2d = inv_freq.reshape(1, H)

    out = pl.pallas_call(
        _rotary_simple_kernel,
        out_shape=jax.ShapeDtypeStruct((S_pad, dim), jnp.float32),
        grid_spec=pltpu.PrefetchScalarGridSpec(
            num_scalar_prefetch=0,
            grid=(S_pad // TS,),
            in_specs=[
                pl.BlockSpec((TS, 1), lambda i: (i, 0)),
                pl.BlockSpec((1, H), lambda i: (0, 0)),   # resident inv_freq
            ],
            out_specs=pl.BlockSpec((TS, dim), lambda i: (i, 0)),
        ),
        compiler_params=pltpu.CompilerParams(
            dimension_semantics=("parallel",)),
    )(pos_pad, inv2d)
    return out[:S]


def rotary_embedding(positions: jax.Array, inv_freq: jax.Array) -> jax.Array:
    """positions: (S,), inv_freq: (dim//2,)  ->  (S, dim) f32 (torch-equivalent)."""
    positions = positions.astype(jnp.float32).reshape(-1)
    inv_freq = inv_freq.astype(jnp.float32).reshape(-1)
    S = positions.shape[0]
    H = inv_freq.shape[0]
    dim = 2 * H

    if dim < _LANE and _LANE % dim == 0:
        return _rotary_packed(positions, inv_freq, S, dim)
    return _rotary_simple(positions, inv_freq, S, H)


def make_inv_freq(dim: int, theta: float = 32768.0) -> jax.Array:
    # Matches: 1.0 / theta ** (torch.arange(0, dim, 2).float() / dim)
    return 1.0 / (theta ** (jnp.arange(0, dim, 2, dtype=jnp.float32) / dim))


if __name__ == "__main__":
    key = jax.random.PRNGKey(0)

    # Small demo matching the module: seq=8 positions, rotary dim=32.
    seq, dim = 8, 32
    positions = jnp.arange(seq, dtype=jnp.float32) + jax.random.uniform(
        key, (seq,), dtype=jnp.float32)
    inv_freq = make_inv_freq(dim)

    out = jax.block_until_ready(rotary_embedding(positions, inv_freq))
    ref_half = positions[:, None] * inv_freq[None, :]
    ref = jnp.concatenate([ref_half, ref_half], axis=-1)
    assert out.shape == (seq, dim)
    assert jnp.allclose(out, ref, atol=1e-4, rtol=1e-4)

    # Also exercise the wide-dim fallback path (dim >= 128).
    seq2, dim2 = 40, 256
    positions2 = jnp.arange(seq2, dtype=jnp.float32)
    inv_freq2 = make_inv_freq(dim2)
    out2 = jax.block_until_ready(rotary_embedding(positions2, inv_freq2))
    ref_half2 = positions2[:, None] * inv_freq2[None, :]
    ref2 = jnp.concatenate([ref_half2, ref_half2], axis=-1)
    assert out2.shape == (seq2, dim2)
    assert jnp.allclose(out2, ref2, atol=1e-4, rtol=1e-4)

    print("KERNEL_OK")
</pallas_src>

<mosaic_0001>
module attributes {stable_mosaic.version = 11 : i64} {
  func.func @_rotary_packed_kernel(%arg0: i32, %arg1: memref<8x16xf32, #tpu.memory_space<vmem>>, %arg2: memref<16x512xf32, #tpu.memory_space<vmem>>, %arg3: memref<8x512xf32, #tpu.memory_space<vmem>>) attributes {dimension_semantics = [#tpu.dimension_semantics<parallel>], iteration_bounds = array<i64: 1>, scalar_prefetch = 0 : i64, scratch_operands = 0 : i64, tpu.core_type = #tpu.core_type<tc>, window_params = [{transform_indices = @transform_0, window_bounds = array<i64: 8, 16>}, {pipeline_mode = #tpu.pipeline_mode<synchronous>, transform_indices = @transform_1, window_bounds = array<i64: 16, 512>}, {transform_indices = @transform_2, window_bounds = array<i64: 8, 512>}]} {
    %c0 = arith.constant 0 : index
    %c0_0 = arith.constant 0 : index
    %0 = vector.load %arg1[%c0, %c0_0] : memref<8x16xf32, #tpu.memory_space<vmem>>, vector<8x16xf32>
    %c0_1 = arith.constant 0 : index
    %c0_2 = arith.constant 0 : index
    %1 = vector.load %arg2[%c0_1, %c0_2] : memref<16x512xf32, #tpu.memory_space<vmem>>, vector<16x512xf32>
    %cst = arith.constant dense<0.000000e+00> : vector<8x512xf32>
    %2 = tpu.matmul %0, %1, %cst {dimension_numbers = #tpu.dot_dimension_numbers<[1], [0], [0], [1], [0, 0, 1, 1], [], []>, precision = #tpu.contract_precision<fp32>} : vector<8x16xf32>, vector<16x512xf32>, vector<8x512xf32> -> vector<8x512xf32>
    %c0_3 = arith.constant 0 : index
    %c0_4 = arith.constant 0 : index
    %3 = vector.load %arg3[%c0_3, %c0_4] : memref<8x512xf32, #tpu.memory_space<vmem>>, vector<8x512xf32>
    tpu.vector_store %arg3[%c0_3, %c0_4], %2 {strides = array<i32>} : memref<8x512xf32, #tpu.memory_space<vmem>>, vector<8x512xf32>,
    return
  }
  func.func @transform_0(%arg0: i32) -> (i32, i32) {
    %c0_i32 = arith.constant 0 : i32
    %c0_i32_0 = arith.constant 0 : i32
    return %arg0, %c0_i32 : i32, i32
  }
  func.func @transform_1(%arg0: i32) -> (i32, i32) {
    %c0_i32 = arith.constant 0 : i32
    %c0_i32_0 = arith.constant 0 : i32
    %c0_i32_1 = arith.constant 0 : i32
    return %c0_i32, %c0_i32_0 : i32, i32
  }
  func.func @transform_2(%arg0: i32) -> (i32, i32) {
    %c0_i32 = arith.constant 0 : i32
    %c0_i32_0 = arith.constant 0 : i32
    return %arg0, %c0_i32 : i32, i32
  }
}

</mosaic_0001>

<bundles_post_ra>
// kernel: tpu_custom_call.1
= control target key start
LH: loop header
LB: loop body
LE: loop exit
PB: predicated region body
PF: predicated region fallthrough
CT: control target
= control target key end

     0   :  { %7 = vsyncpa [#allocation3], 0  ;;  %s902_s0 = inlined_call_operand.hbm [shape: f32[8,16], index: 0, kind: input, shape index: {}]   ;;  %s903_s1 = inlined_call_operand.hbm [shape: f32[16,512], index: 1, kind: input, shape index: {}]   ;;  %s904_s2 = inlined_call_operand.hbm [shape: f32[8,512], index: 2, kind: output, shape index: {}]  }
   0x1   :  { %8 = vsyncpa [#allocation6], 0 }
   0x2   :  { %9 = vsyncpa [#allocation4], 0  ;;  %s15_s11 = sshll.u32 %s902_s0, 4  ;;  %s796_s12 = smov [#allocation2]   ;;  %s16_s11 = int_to_ptr.hbm [resolvable:$true] %s15_s11 }
   0x3   :  { %s17_s13 = sshll.u32 %s796_s12, 4  ;;  %s25_s16 = sshll.u32 %s903_s1, 4  ;;  %s18_s13 = int_to_ptr.vmem [resolvable:$true] %s17_s13  ;;  %s26_s16 = int_to_ptr.hbm [resolvable:$true] %s25_s16 }
   0x4   :  { %20 = dma.hbm_to_vmem [thread:$0]  %s16_s11, 128, %s18_s13, [#allocation3]  }
   0x5   :  { %s797_s17 = smov [#allocation5]   ;;  %s798_s19 = smov 512  }
   0x6   :  { %s27_s18 = sshll.u32 %s797_s17, 4  ;;  %s799_s20 = smov 32   ;;  %s28_s18 = int_to_ptr.vmem [resolvable:$true] %s27_s18 }
   0x7   :  { %33 = dma.hbm_to_vmem [thread:$0]  %s26_s16, 1024, %s28_s18, [#allocation6], %s798_s19, %s798_s19, %s799_s20  }
   0x8   :  { %790 = dma.done.wait [#allocation3], 128  }
   0x9   :  { %791 = vsyncadd [#allocation3], 4294967168 }
   0xa   :  { %792 = dma.done.wait [#allocation6], 1024  }
   0xb   :  { %793 = vsyncadd [#allocation6], 4294966272  ;;  %vm51_vm0 = vcmask 130048   ;;  %v47_v0 = vld [vmem:[#allocation5 + $0x20] sm:$0xff]  ;;  %v42_v2 = vld [vmem:[#allocation2] sm:$0xff]  ;;  %s800_s0 = smov [#allocation7]  }
   0xc   :  { %v43_v1 = vld [vmem:[#allocation5] sm:$0xff]  ;;  %v69_v3 = vand.u32 4294901760, %v47_v0  ;;  %v53_v5 = vsel %vm51_vm0, %v42_v2, 0  ;;  %v48_v6 = vld [vmem:[#allocation5 + $0x28] sm:$0xff]  ;;  %v49_v8 = vld [vmem:[#allocation5 + $0x30] sm:$0xff]  ;;  %s700_s1 = sshll.u32 %s800_s0, 4  ;;  %s701_s1 = int_to_ptr.vmem [resolvable:$true] %s700_s1 }
   0xd   :  { %v822_v4 = vand.u32 4294901760, %v43_v1  ;;  %v44_v7 = vld [vmem:[#allocation5 + $0x8] sm:$0xff]  ;;  %v824_v9 = vand.u32 4294901760, %v53_v5  ;;  %v228_v10 = vand.u32 4294901760, %v48_v6  ;;  %v829_v14 = vand.u32 4294901760, %v49_v8  ;;  %v45_v15 = vld [vmem:[#allocation5 + $0x10] sm:$0xff] }
   0xe   :  { %v826_v11 = vand.u32 4294901760, %v44_v7  ;;  %v97_v12 = vsub.f32 %v47_v0, %v69_v3  ;;  %154 = vmatpush.msra.mxu3 %v69_v3  ;;  %70 = vmatpush.msra.mxu0 %v69_v3  ;;  %v50_v19 = vld [vmem:[#allocation5 + $0x38] sm:$0xff]  ;;  %v840_v25 = vand.u32 4294901760, %v45_v15  ;;  %s702_s23 = sshll.u32 %s904_s2, 4  ;;  %s703_s23 = int_to_ptr.hbm [resolvable:$true] %s702_s23 }
   0xf   :  { %v103_v13 = vsub.f32 %v43_v1, %v822_v4  ;;  %v832_v16 = vsub.f32 %v53_v5, %v824_v9  ;;  %v256_v17 = vsub.f32 %v48_v6, %v228_v10  ;;  %v46_v26 = vld [vmem:[#allocation5 + $0x18] sm:$0xff]  ;;  %v843_v29 = vsub.f32 %v49_v8, %v829_v14 }
  0x10   :  { %v262_v18 = vsub.f32 %v44_v7, %v826_v11  ;;  %129 = vmatpush.msra.mxu2 %v97_v12  ;;  %156 = vmatpush.msra.mxu3 %v822_v4  ;;  %v98_v20 = vand.u32 4294901760, %v97_v12  ;;  %v845_v30 = vand.u32 4294901760, %v50_v19  ;;  %v851_v36 = vand.u32 4294901760, %v46_v26 }
  0x11   :  { %v104_v21 = vand.u32 4294901760, %v103_v13  ;;  %v837_v22 = vand.u32 4294901760, %v832_v16  ;;  %72 = vmatpush.msra.mxu0 %v822_v4  ;;  %v257_v23 = vand.u32 4294901760, %v256_v17  ;;  %v421_v40 = vsub.f32 %v45_v15, %v840_v25 }
  0x12   :  { %v263_v24 = vand.u32 4294901760, %v262_v18  ;;  %132 = vmatpush.msra.mxu2 %v103_v13  ;;  %v99_v27 = vsub.f32 %v97_v12, %v98_v20  ;;  %v416_v41 = vand.u32 4294901760, %v843_v29  ;;  %v574_v42 = vsub.f32 %v50_v19, %v845_v30 }
  0x13   :  { %181 = vmatpush.msrb.mxu0 %v98_v20  ;;  %v105_v28 = vsub.f32 %v103_v13, %v104_v21  ;;  %135 = vmatmul.f32.vlgmr.msra.gmra.mxu2 %v832_v16  ;;  %v76_v31 = vsub.f32 %v832_v16, %v837_v22  ;;  %v258_v32 = vsub.f32 %v256_v17, %v257_v23  ;;  %v422_v44 = vand.u32 4294901760, %v421_v40 }
  0x14   :  { %160 = vmatmul.f32.vlgmr.msra.gmra.mxu3 %v837_v22  ;;  %v264_v33 = vsub.f32 %v262_v18, %v263_v24  ;;  %229 = vmatpush.msrb.mxu2 %v228_v10  ;;  %v100_v34 = vand.u32 4294901760, %v99_v27  ;;  %v580_v43 = vsub.f32 %v46_v26, %v851_v36  ;;  %v417_v45 = vsub.f32 %v843_v29, %v416_v41 }
  0x15   :  { %v106_v35 = vand.u32 4294901760, %v105_v28  ;;  %185 = vmatpush.msrb.mxu0 %v104_v21  ;;  %v853_v37 = vand.u32 4294901760, %v76_v31  ;;  %v259_v38 = vand.u32 4294901760, %v258_v32  ;;  %v575_v46 = vand.u32 4294901760, %v574_v42 }
  0x16   :  { %v265_v39 = vand.u32 4294901760, %v264_v33  ;;  %101 = vmatpush.msra.mxu1 %v100_v34  ;;  %231 = vmatpush.msrb.mxu2 %v826_v11  ;;  %v581_v47 = vand.u32 4294901760, %v580_v43  ;;  %v423_v48 = vsub.f32 %v421_v40, %v422_v44  ;;  %v418_v49 = vand.u32 4294901760, %v417_v45 }
  0x17   :  { %78 = vmatmul.f32.vlgmr.msra.gmra.mxu0 %v853_v37  ;;  %260 = vmatpush.msrb.mxu3 %v259_v38  ;;  %v576_v50 = vsub.f32 %v574_v42, %v575_v46 }
  0x18   :  { %107 = vmatpush.msra.mxu1 %v106_v35  ;;  %340 = vmatpush.msra.mxu2 %v257_v23  ;;  %v582_v51 = vsub.f32 %v580_v43, %v581_v47  ;;  %v424_v52 = vand.u32 4294901760, %v423_v48 }
  0x19   :  { %109 = vmatmul.f32.vlgmr.msra.gmra.mxu1 %v824_v9  ;;  %266 = vmatpush.msrb.mxu3 %v265_v39  ;;  %v577_v53 = vand.u32 4294901760, %v576_v50 }
  0x1a   :  { %206 = vmatpush.msrb.mxu1 %v69_v3  ;;  %288 = vmatpush.msra.mxu0 %v256_v17  ;;  %v583_v54 = vand.u32 4294901760, %v582_v51 }
  0x1b   :  { %237 = vmatmul.f32.vlgmr.msrb.gmra.mxu2 %v853_v37  ;;  %365 = vmatpush.msra.mxu3 %v228_v10 }
  0x1c   :  { %268 = vmatmul.f32.vlgmr.msrb.gmra.mxu3 %v824_v9  ;;  %208 = vmatpush.msrb.mxu1 %v822_v4 }
  0x1d   :  { %344 = vmatpush.msra.mxu2 %v263_v24  ;;  %291 = vmatpush.msra.mxu0 %v262_v18 }
  0x1e   :  { %313 = vmatpush.msra.mxu1 %v228_v10  ;;  %367 = vmatpush.msra.mxu3 %v826_v11 }
  0x1f   :  { %187 = vmatmul.f32.vlgmr.msrb.gmra.mxu0 %v824_v9  ;;  %447 = vmatpush.msrb.mxu2 %v843_v29 }
  0x20   :  { %315 = vmatpush.msra.mxu1 %v826_v11  ;;  %388 = vmatpush.msrb.mxu0 %v829_v14 }
  0x21   :  { %210 = vmatmul.f32.vlgmr.msrb.gmra.mxu1 %v824_v9  ;;  %472 = vmatpush.msrb.mxu3 %v829_v14 }
  0x22   :  { %419 = vmatpush.msrb.mxu1 %v418_v49  ;;  %450 = vmatpush.msrb.mxu2 %v421_v40 }
  0x23   :  { %346 = vmatmul.f32.vlgmr.msra.gmra.mxu2 %v824_v9  ;;  %390 = vmatpush.msrb.mxu0 %v840_v25 }
  0x24   :  { %369 = vmatmul.f32.vlgmr.msra.gmra.mxu3 %v824_v9  ;;  %425 = vmatpush.msrb.mxu1 %v424_v52 }
  0x25   :  { %474 = vmatpush.msrb.mxu3 %v840_v25  ;;  %547 = vmatpush.msra.mxu2 %v845_v30 }
  0x27   :  { %578 = vmatpush.msra.mxu3 %v577_v53  ;;  %294 = vmatmul.f32.vlgmr.msra.gmra.mxu0 %v832_v16 }
  0x28   :  { %549 = vmatpush.msra.mxu2 %v851_v36  ;;  %499 = vmatpush.msra.mxu0 %v416_v41 }
  0x29   :  { %584 = vmatpush.msra.mxu3 %v583_v54  ;;  %319 = vmatmul.f32.vlgmr.msra.gmra.mxu1 %v837_v22 }
  0x2a   :  { %524 = vmatpush.msra.mxu1 %v829_v14  ;;  %503 = vmatpush.msra.mxu0 %v422_v44 }
  0x2b   :  { %453 = vmatmul.f32.vlgmr.msrb.gmra.mxu2 %v832_v16 }
  0x2c   :  { %478 = vmatmul.f32.vlgmr.msrb.gmra.mxu3 %v837_v22  ;;  %526 = vmatpush.msra.mxu1 %v840_v25 }
  0x2d   :  { %658 = vmatpush.msrb.mxu2 %v575_v46  ;;  %683 = vmatpush.msrb.mxu3 %v845_v30 }
  0x2f   :  { %662 = vmatpush.msrb.mxu2 %v581_v47  ;;  %396 = vmatmul.f32.vlgmr.msrb.gmra.mxu0 %v853_v37 }
  0x30   :  { %685 = vmatpush.msrb.mxu3 %v851_v36  ;;  %606 = vmatpush.msrb.mxu0 %v574_v42 }
  0x31   :  { %427 = vmatmul.f32.vlgmr.msrb.gmra.mxu1 %v824_v9 }
  0x32   :  { %631 = vmatpush.msrb.mxu1 %v845_v30  ;;  %609 = vmatpush.msrb.mxu0 %v580_v43 }
  0x33   :  { %555 = vmatmul.f32.vlgmr.msra.gmra.mxu2 %v853_v37 }
  0x34   :  { %586 = vmatmul.f32.vlgmr.msra.gmra.mxu3 %v824_v9  ;;  %633 = vmatpush.msrb.mxu1 %v851_v36 }
  0x37   :  { %505 = vmatmul.f32.vlgmr.msra.gmra.mxu0 %v824_v9 }
  0x39   :  { %528 = vmatmul.f32.vlgmr.msra.gmra.mxu1 %v824_v9 }
  0x3b   :  { %664 = vmatmul.f32.vlgmr.msrb.gmra.mxu2 %v824_v9 }
  0x3c   :  { %687 = vmatmul.f32.vlgmr.msrb.gmra.mxu3 %v824_v9 }
  0x3f   :  { %612 = vmatmul.f32.vlgmr.msrb.gmra.mxu0 %v832_v16 }
  0x41   :  { %637 = vmatmul.f32.vlgmr.msrb.gmra.mxu1 %v837_v22 }
  0x94   :  { %v79_v55 = vpop.f32.mrf.mxu0 }
  0x96   :  { %v110_v56 = vpop.f32.mrf.mxu1  ;;  %v136_v57 = vpop.f32.mrf.mxu2 }
  0x97   :  { %v111_v58 = vadd.f32 %v110_v56, %v79_v55  ;;  %v161_v59 = vpop.f32.mrf.mxu3 }
  0x99   :  { %v137_v60 = vadd.f32 %v136_v57, %v111_v58 }
  0x9b   :  { %v162_v61 = vadd.f32 %v161_v59, %v137_v60 }
  0x9c   :  { %v188_v62 = vpop.f32.mrf.mxu0 }
  0x9d   :  { %v189_v63 = vadd.f32 %v188_v62, %v162_v61 }
  0x9e   :  { %v211_v0 = vpop.f32.mrf.mxu1  ;;  %v238_v1 = vpop.f32.mrf.mxu2 }
  0x9f   :  { %v212_v2 = vadd.f32 %v211_v0, %v189_v63  ;;  %v269_v3 = vpop.f32.mrf.mxu3 }
  0xa0   :  { %v270_v4 = vadd.f32 %v269_v3, %v238_v1 }
  0xa1   :  { %691 = vst [vmem:[#allocation7] sm:$0xff] %v212_v2 }
  0xa4   :  { %v295_v5 = vpop.f32.mrf.mxu0 }
  0xa5   :  { %v296_v6 = vadd.f32 %v295_v5, %v270_v4 }
  0xa6   :  { %v320_v7 = vpop.f32.mrf.mxu1  ;;  %v347_v8 = vpop.f32.mrf.mxu2 }
  0xa7   :  { %v321_v9 = vadd.f32 %v320_v7, %v296_v6  ;;  %v370_v10 = vpop.f32.mrf.mxu3 }
  0xa9   :  { %v348_v11 = vadd.f32 %v347_v8, %v321_v9 }
  0xab   :  { %v371_v12 = vadd.f32 %v370_v10, %v348_v11 }
  0xac   :  { %v397_v13 = vpop.f32.mrf.mxu0 }
  0xad   :  { %692 = vst [vmem:[#allocation7 + $0x8] sm:$0xff] %v371_v12 }
  0xae   :  { %v428_v14 = vpop.f32.mrf.mxu1  ;;  %v454_v15 = vpop.f32.mrf.mxu2 }
  0xaf   :  { %v429_v16 = vadd.f32 %v428_v14, %v397_v13  ;;  %v479_v17 = vpop.f32.mrf.mxu3 }
  0xb1   :  { %v455_v18 = vadd.f32 %v454_v15, %v429_v16 }
  0xb3   :  { %v480_v19 = vadd.f32 %v479_v17, %v455_v18 }
  0xb4   :  { %v506_v20 = vpop.f32.mrf.mxu0 }
  0xb5   :  { %v507_v21 = vadd.f32 %v506_v20, %v480_v19 }
  0xb6   :  { %v529_v22 = vpop.f32.mrf.mxu1  ;;  %v556_v23 = vpop.f32.mrf.mxu2 }
  0xb7   :  { %v530_v24 = vadd.f32 %v529_v22, %v507_v21  ;;  %v587_v25 = vpop.f32.mrf.mxu3 }
  0xb8   :  { %v588_v26 = vadd.f32 %v587_v25, %v556_v23 }
  0xb9   :  { %693 = vst [vmem:[#allocation7 + $0x10] sm:$0xff] %v530_v24 }
  0xbc   :  { %v613_v27 = vpop.f32.mrf.mxu0 }
  0xbd   :  { %v614_v28 = vadd.f32 %v613_v27, %v588_v26 }
  0xbe   :  { %v638_v29 = vpop.f32.mrf.mxu1  ;;  %v665_v30 = vpop.f32.mrf.mxu2 }
  0xbf   :  { %v639_v31 = vadd.f32 %v638_v29, %v614_v28  ;;  %v688_v32 = vpop.f32.mrf.mxu3 }
  0xc1   :  { %v666_v33 = vadd.f32 %v665_v30, %v639_v31 }
  0xc3   :  { %v689_v34 = vadd.f32 %v688_v32, %v666_v33 }
  0xc5   :  { %694 = vst [vmem:[#allocation7 + $0x18] sm:$0xff] %v689_v34 }
  0xc6   :  { %705 = dma.vmem_to_hbm [thread:$0]  %s701_s1, 512, %s703_s23, [#allocation4]  }
  0xc7   :  { %794 = dma.done.wait [#allocation4], 512  }
  0xc8   :  { %795 = vsyncadd [#allocation4], 4294966784 }
  0xc9   :  { %710 = vsyncpa [#allocation3], 1 }
  0xca   :  { %711 = vsyncpa [#allocation6], 1 }
  0xcb   :  { %712 = vsyncpa [#allocation4], 1 }

</bundles_post_ra>
